<compile_context>
chip_gen: v5e
topology: v5e:2x2
jax: 0.10.0
libtpu: 0.0.40
codegen_flags: <defaults>
</compile_context>

<pallas_src>
import jax
import jax.numpy as jnp
from jax import lax
from jax.experimental import pallas as pl
from jax.experimental.pallas import tpu as pltpu

_LANE = 128
_PAD_LOGIT = -100.0  # sigmoid/log1p(exp(-|x|)) of masked/padded elements underflow to ~0
_NUM_STATS = 4       # [bce_sum, intersect(p*y), sum_pred(p), sum_gt(y)]


def _make_kernel(C, tr, R, tiles_per_chunk, need_mask, approx_reciprocal):
    """Builds the per-(batch, chunk, spatial-tile) statistics kernel."""
    G = C * 8                     # rows per statistic in the lane-dense accumulator
    r8 = (tr // 8) * 8            # rows handled by the vreg-aligned fast fold
    rem = tr - r8                 # leftover rows (< 8); only for tiny inputs

    def fold_rows(stat):
        # (C, tr, 128) f32 -> (C*8, 128): group rows in blocks of 8 (one vreg each)
        # and add them together.  Pure elementwise vreg adds on the VALU, no XLU.
        if r8 > 0:
            main = jnp.sum(stat[:, :r8, :].reshape(C, r8 // 8, 8, _LANE), axis=1)
        else:
            main = jnp.zeros((C, 8, _LANE), jnp.float32)
        if rem:
            tail = stat[:, r8:, :]
            pad = jnp.zeros((C, 8 - rem, _LANE), jnp.float32)
            main = main + jnp.concatenate([tail, pad], axis=1)
        return main.reshape(G, _LANE)

    def kernel(x_ref, y_ref, out_ref):
        s = pl.program_id(2)

        @pl.when(s == 0)
        def _():
            out_ref[...] = jnp.zeros_like(out_ref)

        # Upcast inside the kernel so callers can stream bf16 logits / int8 targets.
        x = x_ref[...].astype(jnp.float32)   # (C, tr, 128) logits
        y = y_ref[...].astype(jnp.float32)   # (C, tr, 128) one-hot / region targets

        if need_mask:
            # Ragged last tile (and clamped duplicate tiles of the parallel chunk
            # axis): rows at or past R contribute exactly ~0 after this masking.
            row0 = (pl.program_id(1) * tiles_per_chunk + s) * tr
            rows = lax.broadcasted_iota(jnp.int32, (1, tr, _LANE), 1) + row0
            valid = rows < R
            x = jnp.where(valid, x, _PAD_LOGIT)
            y = jnp.where(valid, y, 0.0)

        # Shared transcendental: e = exp(-|x|) feeds both the stable BCE and sigmoid.
        e = jnp.exp(-jnp.abs(x))

        # BCEWithLogitsLoss elementwise (PyTorch numerically-stable form):
        #   max(x, 0) - x*y + log1p(exp(-|x|))
        bce = jnp.maximum(x, 0.0) - x * y + jnp.log1p(e)

        # sigmoid(x) reusing e:  x >= 0 -> 1/(1+e) ;  x < 0 -> e/(1+e)
        if approx_reciprocal:
            inv = pl.reciprocal(1.0 + e, approx=True)   # EUP vrcp; enable on v7x
        else:
            inv = 1.0 / (1.0 + e)
        p = jnp.where(x >= 0.0, inv, e * inv)

        # Lane-dense accumulation into the resident (4*C*8, 128) output block.
        out_ref[0 * G:1 * G, :] += fold_rows(bce)
        out_ref[1 * G:2 * G, :] += fold_rows(p * y)
        out_ref[2 * G:3 * G, :] += fold_rows(p)
        out_ref[3 * G:4 * G, :] += fold_rows(y)

    return kernel


def dc_and_bce_loss(net_output, target, *, weight_ce=1.0, weight_dice=1.0,
                    smooth=1e-5, tile_rows=1024, spatial_chunks=None,
                    approx_reciprocal=False, buffer_count=2):
    """DC_and_BCE_loss.forward with use_ignore_label=False, batch_dice=True, do_bg=True.

    net_output: (B, C, *spatial) logits. Pass bf16 (not pre-cast to f32) to halve
                HBM traffic; the kernel upcasts per tile.
    target    : (B, C, *spatial) one-hot / region targets. int8 / bool / float all OK.
    approx_reciprocal: use EUP approx reciprocal for the sigmoid denominator
                (recommended on v7x; adds ~2^-12 relative error to dice stats).
    buffer_count: pipeline depth for the input BlockSpecs (sweep 3 on v7x).
    """
    # TODO(synk): use_ignore_label=True path (mask taken from target[:, -1]) not implemented.
    assert net_output.shape == target.shape
    B, C = int(net_output.shape[0]), int(net_output.shape[1])
    S = 1
    for d in net_output.shape[2:]:
        S *= int(d)
    n_elems = B * C * S

    x = net_output.reshape(B, C, S)
    y = target.reshape(B, C, S)
    if S % _LANE != 0:
        # TODO(synk): replace this fallback pad-copy with in-kernel lane-tail masking
        # for spatial sizes that are not a multiple of 128 (rare for nnU-Net patches).
        S_128 = pl.cdiv(S, _LANE) * _LANE
        x = jnp.pad(x, ((0, 0), (0, 0), (0, S_128 - S)), constant_values=_PAD_LOGIT)
        y = jnp.pad(y, ((0, 0), (0, 0), (0, S_128 - S)), constant_values=0)
    else:
        S_128 = S
    R = S_128 // _LANE
    # Free row-major split (no copy): pack spatial as (rows, 128 lanes).
    x = x.reshape(B, C, R, _LANE)
    y = y.reshape(B, C, R, _LANE)

    # ---- tiling --------------------------------------------------------------
    tile_rows = max(8, int(tile_rows))
    if R >= 8:
        tr = (min(tile_rows, R) // 8) * 8       # multiple of 8 sublanes, <= R
    else:
        tr = R                                   # full-dim block for tiny inputs
    n_tiles = pl.cdiv(R, tr)

    if spatial_chunks is None:
        # Feed both v7x TensorCores even when B == 1 (harmless on 1-TC chips).
        spatial_chunks = 2 if (B == 1 and n_tiles >= 2) else 1
    NP = max(1, min(int(spatial_chunks), n_tiles))
    tiles_per_chunk = pl.cdiv(n_tiles, NP)
    last_block = n_tiles - 1
    need_mask = (NP * tiles_per_chunk * tr) != R

    def in_index(b, p, s):
        idx = jnp.minimum(p * tiles_per_chunk + s, last_block)
        return (b, 0, idx, 0)

    def out_index(b, p, s):
        return (b, p, 0, 0)

    spec_kwargs = {}
    if buffer_count is not None and int(buffer_count) != 2:
        spec_kwargs["pipeline_mode"] = pl.Buffered(int(buffer_count))

    def make_in_spec():
        return pl.BlockSpec((None, C, tr, _LANE), in_index, **spec_kwargs)

    STAT_ROWS = _NUM_STATS * C * 8

    # VMEM budget: pipeline buffers for both inputs + resident output + headroom.
    # Capped at 48 MiB so v7x (64 MiB physical per TC) keeps headroom.
    nbuf = int(buffer_count) if buffer_count else 2
    tile_in_bytes = C * tr * _LANE * (x.dtype.itemsize + y.dtype.itemsize)
    vmem_limit = int(min(48 * 1024 * 1024,
                         max(16 * 1024 * 1024, nbuf * tile_in_bytes + (4 << 20))))

    cost = pl.CostEstimate(
        flops=int(16 * B * C * R * _LANE),
        transcendentals=int(2 * B * C * R * _LANE),
        bytes_accessed=int(x.size) * x.dtype.itemsize
        + int(y.size) * y.dtype.itemsize
        + B * NP * STAT_ROWS * _LANE * 4,
    )

    kernel = _make_kernel(C, tr, R, tiles_per_chunk, need_mask, bool(approx_reciprocal))

    stats = pl.pallas_call(
        kernel,
        out_shape=jax.ShapeDtypeStruct((B, NP, STAT_ROWS, _LANE), jnp.float32),
        grid_spec=pltpu.PrefetchScalarGridSpec(
            num_scalar_prefetch=0,
            grid=(B, NP, tiles_per_chunk),
            in_specs=[make_in_spec(), make_in_spec()],
            out_specs=pl.BlockSpec((None, None, STAT_ROWS, _LANE), out_index)),
        compiler_params=pltpu.CompilerParams(
            dimension_semantics=("parallel", "parallel", "arbitrary"),
            vmem_limit_bytes=vmem_limit),
        cost_estimate=cost,
    )(x, y)

    # Tiny final reduction in plain JAX (lane/sublane collapse + batch/chunk sums).
    totals = jnp.sum(stats.reshape(B, NP, _NUM_STATS, C, 8, _LANE),
                     axis=(0, 1, 4, 5))                     # (4, C)

    # BCEWithLogitsLoss(reduction='mean') — mean over the *unpadded* element count.
    ce_loss = jnp.sum(totals[0]) / n_elems

    # MemoryEfficientSoftDiceLoss with batch_dice=True: stats summed over batch.
    intersect, sum_pred, sum_gt = totals[1], totals[2], totals[3]
    dc = (2.0 * intersect + smooth) / jnp.maximum(sum_gt + sum_pred + smooth, 1e-8)
    dc_loss = -jnp.mean(dc)

    return weight_ce * ce_loss + weight_dice * dc_loss


def _reference_loss(net_output, target, *, weight_ce=1.0, weight_dice=1.0, smooth=1e-5):
    """Pure-JAX reference of the same forward (for a correctness check)."""
    x = net_output.astype(jnp.float32)
    y = target.astype(jnp.float32)
    bce = jnp.maximum(x, 0.0) - x * y + jnp.log1p(jnp.exp(-jnp.abs(x)))
    ce_loss = jnp.mean(bce)
    p = jax.nn.sigmoid(x)
    axes = tuple(range(2, x.ndim))
    intersect = jnp.sum(p * y, axis=axes).sum(0)
    sum_pred = jnp.sum(p, axis=axes).sum(0)
    sum_gt = jnp.sum(y, axis=axes).sum(0)
    dc = (2.0 * intersect + smooth) / jnp.maximum(sum_gt + sum_pred + smooth, 1e-8)
    dc_loss = -jnp.mean(dc)
    return weight_ce * ce_loss + weight_dice * dc_loss


if __name__ == "__main__":
    key = jax.random.PRNGKey(0)
    k1, k2 = jax.random.split(key)

    B, C, H, W = 2, 4, 16, 16  # NCHW; target must be one-hot / region-encoded
    net_output = jax.random.normal(k1, (B, C, H, W), dtype=jnp.float32)
    target = jax.random.bernoulli(k2, p=0.3, shape=(B, C, H, W)).astype(jnp.float32)

    # f32 path
    loss = jax.block_until_ready(dc_and_bce_loss(net_output, target))
    ref = jax.block_until_ready(_reference_loss(net_output, target))
    assert jnp.allclose(loss, ref, rtol=1e-5, atol=1e-5), (loss, ref)

    # Narrow-dtype caller contract (bf16 logits, int8 targets) — kernel upcasts per
    # tile, cutting HBM bytes; values match the f32 reference on the same inputs.
    logits_bf16 = net_output.astype(jnp.bfloat16)
    target_i8 = target.astype(jnp.int8)
    loss_n = jax.block_until_ready(dc_and_bce_loss(logits_bf16, target_i8))
    ref_n = jax.block_until_ready(_reference_loss(
        logits_bf16.astype(jnp.float32), target_i8.astype(jnp.float32)))
    assert jnp.allclose(loss_n, ref_n, rtol=1e-5, atol=1e-5), (loss_n, ref_n)

    print("KERNEL_OK")
</pallas_src>

<mosaic_0001>
module attributes {stable_mosaic.version = 11 : i64} {
  func.func @kernel(%arg0: i32, %arg1: i32, %arg2: i32, %arg3: memref<1x4x2x128xf32, #tpu.memory_space<vmem>>, %arg4: memref<1x4x2x128xf32, #tpu.memory_space<vmem>>, %arg5: memref<1x1x128x128xf32, #tpu.memory_space<vmem>>) attributes {dimension_semantics = [#tpu.dimension_semantics<parallel>, #tpu.dimension_semantics<parallel>, #tpu.dimension_semantics<arbitrary>], iteration_bounds = array<i64: 2, 1, 1>, scalar_prefetch = 0 : i64, scratch_operands = 0 : i64, tpu.core_type = #tpu.core_type<tc>, window_params = [{transform_indices = @transform_0, window_bounds = array<i64: 1, 4, 2, 128>}, {transform_indices = @transform_1, window_bounds = array<i64: 1, 4, 2, 128>}, {transform_indices = @transform_2, window_bounds = array<i64: 1, 1, 128, 128>}]} {
    %c0_i32 = arith.constant 0 : i32
    %0 = arith.cmpi eq, %arg2, %c0_i32 : i32
    %1 = arith.extui %0 : i1 to i32
    %c0_i32_0 = arith.constant 0 : i32
    %2 = arith.cmpi ne, %1, %c0_i32_0 : i32
    scf.if %2 {
      %cst_49 = arith.constant 0.000000e+00 : f32
      %70 = vector.broadcast %cst_49 : f32 to vector<128x128xf32>
      %c0_50 = arith.constant 0 : index
      %c0_51 = arith.constant 0 : index
      %c0_52 = arith.constant 0 : index
      %c0_53 = arith.constant 0 : index
      %71 = vector.load %arg5[%c0_50, %c0_51, %c0_52, %c0_53] : memref<1x1x128x128xf32, #tpu.memory_space<vmem>>, vector<1x1x128x128xf32>
      %72 = vector.shape_cast %71 : vector<1x1x128x128xf32> to vector<128x128xf32>
      %73 = vector.shape_cast %70 : vector<128x128xf32> to vector<1x1x128x128xf32>
      tpu.vector_store %arg5[%c0_50, %c0_51, %c0_52, %c0_53], %73 {strides = array<i32>} : memref<1x1x128x128xf32, #tpu.memory_space<vmem>>, vector<1x1x128x128xf32>,
    } else {
    }
    %c0 = arith.constant 0 : index
    %c0_1 = arith.constant 0 : index
    %c0_2 = arith.constant 0 : index
    %c0_3 = arith.constant 0 : index
    %3 = vector.load %arg3[%c0, %c0_1, %c0_2, %c0_3] : memref<1x4x2x128xf32, #tpu.memory_space<vmem>>, vector<1x4x2x128xf32>
    %4 = vector.shape_cast %3 : vector<1x4x2x128xf32> to vector<4x2x128xf32>
    %c0_4 = arith.constant 0 : index
    %c0_5 = arith.constant 0 : index
    %c0_6 = arith.constant 0 : index
    %c0_7 = arith.constant 0 : index
    %5 = vector.load %arg4[%c0_4, %c0_5, %c0_6, %c0_7] : memref<1x4x2x128xf32, #tpu.memory_space<vmem>>, vector<1x4x2x128xf32>
    %6 = vector.shape_cast %5 : vector<1x4x2x128xf32> to vector<4x2x128xf32>
    %7 = math.absf %4 : vector<4x2x128xf32>
    %cst = arith.constant 0.000000e+00 : f32
    %8 = vector.broadcast %cst : f32 to vector<4x2x128xf32>
    %9 = arith.subf %8, %7 : vector<4x2x128xf32>
    %10 = math.exp %9 : vector<4x2x128xf32>
    %cst_8 = arith.constant 0.000000e+00 : f32
    %11 = vector.broadcast %cst_8 : f32 to vector<4x2x128xf32>
    %12 = arith.maximumf %4, %11 : vector<4x2x128xf32>
    %13 = arith.mulf %4, %6 : vector<4x2x128xf32>
    %14 = arith.subf %12, %13 : vector<4x2x128xf32>
    %15 = math.log1p %10 : vector<4x2x128xf32>
    %16 = arith.addf %14, %15 : vector<4x2x128xf32>
    %cst_9 = arith.constant 1.000000e+00 : f32
    %17 = vector.broadcast %cst_9 : f32 to vector<4x2x128xf32>
    %18 = arith.addf %17, %10 : vector<4x2x128xf32>
    %cst_10 = arith.constant 1.000000e+00 : f32
    %19 = vector.broadcast %cst_10 : f32 to vector<4x2x128xf32>
    %20 = arith.divf %19, %18 : vector<4x2x128xf32>
    %cst_11 = arith.constant 0.000000e+00 : f32
    %21 = vector.broadcast %cst_11 : f32 to vector<4x2x128xf32>
    %22 = arith.cmpf oge, %4, %21 : vector<4x2x128xf32>
    %23 = arith.mulf %10, %20 : vector<4x2x128xf32>
    %24 = arith.select %22, %20, %23 : vector<4x2x128xi1>, vector<4x2x128xf32>
    %c0_12 = arith.constant 0 : index
    %c0_13 = arith.constant 0 : index
    %c0_14 = arith.constant 0 : index
    %c0_15 = arith.constant 0 : index
    %25 = vector.load %arg5[%c0_12, %c0_13, %c0_14, %c0_15] : memref<1x1x128x128xf32, #tpu.memory_space<vmem>>, vector<1x1x32x128xf32>
    %26 = vector.shape_cast %25 : vector<1x1x32x128xf32> to vector<32x128xf32>
    %cst_16 = arith.constant 0.000000e+00 : f32
    %27 = vector.broadcast %cst_16 : f32 to vector<4x8x128xf32>
    %cst_17 = arith.constant 0.000000e+00 : f32
    %28 = vector.broadcast %cst_17 : f32 to vector<4x6x128xf32>
    %29 = tpu.concatenate %16, %28 in 1 : vector<4x2x128xf32>, vector<4x6x128xf32> -> vector<4x8x128xf32>
    %30 = arith.addf %27, %29 : vector<4x8x128xf32>
    %31 = vector.shape_cast %30 : vector<4x8x128xf32> to vector<32x128xf32>
    %32 = arith.addf %26, %31 : vector<32x128xf32>
    %c0_18 = arith.constant 0 : index
    %c0_19 = arith.constant 0 : index
    %c0_20 = arith.constant 0 : index
    %c0_21 = arith.constant 0 : index
    %33 = vector.load %arg5[%c0_18, %c0_19, %c0_20, %c0_21] : memref<1x1x128x128xf32, #tpu.memory_space<vmem>>, vector<1x1x32x128xf32>
    %34 = vector.shape_cast %33 : vector<1x1x32x128xf32> to vector<32x128xf32>
    %35 = vector.shape_cast %32 : vector<32x128xf32> to vector<1x1x32x128xf32>
    tpu.vector_store %arg5[%c0_18, %c0_19, %c0_20, %c0_21], %35 {strides = array<i32>} : memref<1x1x128x128xf32, #tpu.memory_space<vmem>>, vector<1x1x32x128xf32>,
    %c0_22 = arith.constant 0 : index
    %c0_23 = arith.constant 0 : index
    %c32 = arith.constant 32 : index
    %c0_24 = arith.constant 0 : index
    %36 = vector.load %arg5[%c0_22, %c0_23, %c32, %c0_24] : memref<1x1x128x128xf32, #tpu.memory_space<vmem>>, vector<1x1x32x128xf32>
    %37 = vector.shape_cast %36 : vector<1x1x32x128xf32> to vector<32x128xf32>
    %38 = arith.mulf %24, %6 : vector<4x2x128xf32>
    %cst_25 = arith.constant 0.000000e+00 : f32
    %39 = vector.broadcast %cst_25 : f32 to vector<4x8x128xf32>
    %cst_26 = arith.constant 0.000000e+00 : f32
    %40 = vector.broadcast %cst_26 : f32 to vector<4x6x128xf32>
    %41 = tpu.concatenate %38, %40 in 1 : vector<4x2x128xf32>, vector<4x6x128xf32> -> vector<4x8x128xf32>
    %42 = arith.addf %39, %41 : vector<4x8x128xf32>
    %43 = vector.shape_cast %42 : vector<4x8x128xf32> to vector<32x128xf32>
    %44 = arith.addf %37, %43 : vector<32x128xf32>
    %c0_27 = arith.constant 0 : index
    %c0_28 = arith.constant 0 : index
    %c32_29 = arith.constant 32 : index
    %c0_30 = arith.constant 0 : index
    %45 = vector.load %arg5[%c0_27, %c0_28, %c32_29, %c0_30] : memref<1x1x128x128xf32, #tpu.memory_space<vmem>>, vector<1x1x32x128xf32>
    %46 = vector.shape_cast %45 : vector<1x1x32x128xf32> to vector<32x128xf32>
    %47 = vector.shape_cast %44 : vector<32x128xf32> to vector<1x1x32x128xf32>
    tpu.vector_store %arg5[%c0_27, %c0_28, %c32_29, %c0_30], %47 {strides = array<i32>} : memref<1x1x128x128xf32, #tpu.memory_space<vmem>>, vector<1x1x32x128xf32>,
    %c0_31 = arith.constant 0 : index
    %c0_32 = arith.constant 0 : index
    %c64 = arith.constant 64 : index
    %c0_33 = arith.constant 0 : index
    %48 = vector.load %arg5[%c0_31, %c0_32, %c64, %c0_33] : memref<1x1x128x128xf32, #tpu.memory_space<vmem>>, vector<1x1x32x128xf32>
    %49 = vector.shape_cast %48 : vector<1x1x32x128xf32> to vector<32x128xf32>
    %cst_34 = arith.constant 0.000000e+00 : f32
    %50 = vector.broadcast %cst_34 : f32 to vector<4x8x128xf32>
    %cst_35 = arith.constant 0.000000e+00 : f32
    %51 = vector.broadcast %cst_35 : f32 to vector<4x6x128xf32>
    %52 = tpu.concatenate %24, %51 in 1 : vector<4x2x128xf32>, vector<4x6x128xf32> -> vector<4x8x128xf32>
    %53 = arith.addf %50, %52 : vector<4x8x128xf32>
    %54 = vector.shape_cast %53 : vector<4x8x128xf32> to vector<32x128xf32>
    %55 = arith.addf %49, %54 : vector<32x128xf32>
    %c0_36 = arith.constant 0 : index
    %c0_37 = arith.constant 0 : index
    %c64_38 = arith.constant 64 : index
    %c0_39 = arith.constant 0 : index
    %56 = vector.load %arg5[%c0_36, %c0_37, %c64_38, %c0_39] : memref<1x1x128x128xf32, #tpu.memory_space<vmem>>, vector<1x1x32x128xf32>
    %57 = vector.shape_cast %56 : vector<1x1x32x128xf32> to vector<32x128xf32>
    %58 = vector.shape_cast %55 : vector<32x128xf32> to vector<1x1x32x128xf32>
    tpu.vector_store %arg5[%c0_36, %c0_37, %c64_38, %c0_39], %58 {strides = array<i32>} : memref<1x1x128x128xf32, #tpu.memory_space<vmem>>, vector<1x1x32x128xf32>,
    %c0_40 = arith.constant 0 : index
    %c0_41 = arith.constant 0 : index
    %c96 = arith.constant 96 : index
    %c0_42 = arith.constant 0 : index
    %59 = vector.load %arg5[%c0_40, %c0_41, %c96, %c0_42] : memref<1x1x128x128xf32, #tpu.memory_space<vmem>>, vector<1x1x32x128xf32>
    %60 = vector.shape_cast %59 : vector<1x1x32x128xf32> to vector<32x128xf32>
    %cst_43 = arith.constant 0.000000e+00 : f32
    %61 = vector.broadcast %cst_43 : f32 to vector<4x8x128xf32>
    %cst_44 = arith.constant 0.000000e+00 : f32
    %62 = vector.broadcast %cst_44 : f32 to vector<4x6x128xf32>
    %63 = tpu.concatenate %6, %62 in 1 : vector<4x2x128xf32>, vector<4x6x128xf32> -> vector<4x8x128xf32>
    %64 = arith.addf %61, %63 : vector<4x8x128xf32>
    %65 = vector.shape_cast %64 : vector<4x8x128xf32> to vector<32x128xf32>
    %66 = arith.addf %60, %65 : vector<32x128xf32>
    %c0_45 = arith.constant 0 : index
    %c0_46 = arith.constant 0 : index
    %c96_47 = arith.constant 96 : index
    %c0_48 = arith.constant 0 : index
    %67 = vector.load %arg5[%c0_45, %c0_46, %c96_47, %c0_48] : memref<1x1x128x128xf32, #tpu.memory_space<vmem>>, vector<1x1x32x128xf32>
    %68 = vector.shape_cast %67 : vector<1x1x32x128xf32> to vector<32x128xf32>
    %69 = vector.shape_cast %66 : vector<32x128xf32> to vector<1x1x32x128xf32>
    tpu.vector_store %arg5[%c0_45, %c0_46, %c96_47, %c0_48], %69 {strides = array<i32>} : memref<1x1x128x128xf32, #tpu.memory_space<vmem>>, vector<1x1x32x128xf32>,
    return
  }
  func.func @transform_0(%arg0: i32, %arg1: i32, %arg2: i32) -> (i32, i32, i32, i32) {
    %c1_i32 = arith.constant 1 : i32
    %0 = arith.muli %arg1, %c1_i32 : i32
    %1 = arith.addi %0, %arg2 : i32
    %c0_i32 = arith.constant 0 : i32
    %2 = arith.minsi %1, %c0_i32 : i32
    %c0_i32_0 = arith.constant 0 : i32
    %c0_i32_1 = arith.constant 0 : i32
    %c0_i32_2 = arith.constant 0 : i32
    return %arg0, %c0_i32_0, %2, %c0_i32_1 : i32, i32, i32, i32
  }
  func.func @transform_1(%arg0: i32, %arg1: i32, %arg2: i32) -> (i32, i32, i32, i32) {
    %c1_i32 = arith.constant 1 : i32
    %0 = arith.muli %arg1, %c1_i32 : i32
    %1 = arith.addi %0, %arg2 : i32
    %c0_i32 = arith.constant 0 : i32
    %2 = arith.minsi %1, %c0_i32 : i32
    %c0_i32_0 = arith.constant 0 : i32
    %c0_i32_1 = arith.constant 0 : i32
    %c0_i32_2 = arith.constant 0 : i32
    return %arg0, %c0_i32_0, %2, %c0_i32_1 : i32, i32, i32, i32
  }
  func.func @transform_2(%arg0: i32, %arg1: i32, %arg2: i32) -> (i32, i32, i32, i32) {
    %c0_i32 = arith.constant 0 : i32
    %c0_i32_0 = arith.constant 0 : i32
    %c0_i32_1 = arith.constant 0 : i32
    return %arg0, %arg1, %c0_i32, %c0_i32_0 : i32, i32, i32, i32
  }
}

</mosaic_0001>

<bundles_post_ra>
// kernel: tpu_custom_call.1
= control target key start
LH: loop header
LB: loop body
LE: loop exit
PB: predicated region body
PF: predicated region fallthrough
CT: control target
= control target key end

     0   :  { %7 = vsyncpa [#allocation3], 0  ;;  %s1310_s0 = inlined_call_operand.hbm [shape: f32[2,4,2,128], index: 0, kind: input, shape index: {}]   ;;  %s1311_s1 = inlined_call_operand.hbm [shape: f32[2,4,2,128], index: 1, kind: input, shape index: {}]   ;;  %s1312_s2 = inlined_call_operand.hbm [shape: f32[2,1,128,128], index: 2, kind: output, shape index: {}]  }
   0x1   :  { %9 = vsyncpa [#allocation3 + $0x1], 0 }
   0x2   :  { %10 = vsyncpa [#allocation6], 0 }
   0x3   :  { %12 = vsyncpa [#allocation6 + $0x1], 0 }
   0x4   :  { %13 = vsyncpa [#allocation4], 0 }
   0x5   :  { %15 = vsyncpa [#allocation4 + $0x1], 0  ;;  %s931_s9 = smov 0   ;;  %s933_s10 = smov 0  }
   0x6   :  { %s935_s11 = smov 0   ;;  %s937_s12 = smov 0  }
   0x7   :  { %s939_s13 = smov 0   ;;  %s941_s14 = smov 0  }
   0x8 LB: > { %s646_s15 = sadd.s32 4294967295, %s910_s14   ;;  %s647_s16 = sadd.s32 4294967294, %s910_s14   ;;  %s910_s14 = sphi %s941_s14, %s21_s14   ;;  %s906_s13 = sphi %s939_s13, %s1342_s13   ;;  %s902_s12 = sphi %s937_s12, %s1341_s12   ;;  %s898_s11 = sphi %s935_s11, %s1340_s11   ;;  %s894_s10 = sphi %s933_s10, %s1339_s10   ;;  %s890_s9 = sphi %s931_s9, %s1338_s9  }
   0x9   : > { %s40_s17 = sadd.s32 1, %s906_s13  ;;  %s55_s18 = sadd.s32 1, %s898_s11 }
   0xa   : > { %p42_p0 = scmp.ge.s32.totalorder %s40_s17, 2  ;;  %p62_p1 = scmp.ne.s32.totalorder %s898_s11, %s894_s10 }
   0xb   : > { %p63_p2 = scmp.eq.s32.totalorder %s910_s14, 0  ;;  %p68_p3 = scmp.ne.s32.totalorder %s894_s10, %s890_s9 }
   0xc   : > { %s1344_s17 = smov (%p42_p0, %s40_s17), 0  ;;  %p69_p5 = scmp.eq.s32.totalorder %s646_s15, 0 }
   0xd   : > { %p972_p4 = por %p63_p2, %p62_p1  ;;  %s50_s20 = ssub.s32 %s906_s13, %s1344_s17 }
   0xe   : > { %p128_p6 = scmp.eq.s32.totalorder %s646_s15, 1  ;;  %p53_p7 = scmp.eq.s32.totalorder %s50_s20, 0 }
   0xf   : > { %p978_p8 = por %p69_p5, %p68_p3  ;;  %p134_p10 = scmp.eq.s32.totalorder %s647_s16, 1 }
  0x10   : > { %p982_p9 = por %p128_p6, %p62_p1  ;;  %p649_p12 = scmp.ge.s32.totalorder %s910_s14, 2 }
  0x11   : > { %s987_s23 = scalar_select %p53_p7, %s898_s11, %s55_s18  }
  0x12   : > { %p989_p11 = por %p134_p10, %p68_p3  ;;  %p685_p13 = scmp.lt.s32.totalorder %s910_s14, 2 }
  0x13   : > { %s996_s25 = sand.u32 1, %s898_s11   ;;  %s665_s27 = sshll.u32 %s906_s13, 3 }
  0x14   : > { %s650_s26 = sshll.u32 %s996_s25, 3  ;;  %s167_s30 = scalar_lea.hbm %s1310_s0, %s665_s27 }
  0x15   : > { %s158_s3 = scalar_lea.vmem [#allocation2], %s650_s26  ;;  %s168_s5 = sshll.u32 %s167_s30, 4  ;;  %s169_s5 = int_to_ptr.hbm [resolvable:$true] %s168_s5 }
  0x16   : > { %s170_s4 = sshll.u32 %s158_s3, 4  ;;  %p1005_p0 = pnand %p685_p13, %p972_p4  ;;  %s171_s4 = int_to_ptr.vmem [resolvable:$true] %s170_s4 }
  0x17   : > { %p656_p1 = scmp.ge.s32.totalorder %s910_s14, 1  ;;  %s155_s7 = scalar_lea.sflag [#allocation3], %s996_s25 }
  0x18   : > { %s912_s8 = smov 32   ;;  %s913_s15 = smov 2  }
  0x19   : > { %677 = dma.hbm_to_vmem [thread:$0]  (!%p1005_p0), %s169_s5, 128, %s171_s4, %s155_s7, %s912_s8, %s912_s8, %s913_s15  }
  0x1a   : > { %p204_p2 = scmp.lt.s32.totalorder %s910_s14, 3  ;;  %s193_s20 = scalar_lea.hbm %s1311_s1, %s665_s27 }
  0x1b   : > { %s194_s28 = sshll.u32 %s193_s20, 4  ;;  %s184_s19 = scalar_lea.vmem [#allocation5], %s650_s26  ;;  %s195_s28 = int_to_ptr.hbm [resolvable:$true] %s194_s28 }
  0x1c   : > { %p205_p3 = pnand %p656_p1, %p204_p2  ;;  %s196_s29 = sshll.u32 %s184_s19, 4  ;;  %s197_s29 = int_to_ptr.vmem [resolvable:$true] %s196_s29 }
  0x1d   : > { %s181_s30 = scalar_lea.sflag [#allocation6], %s996_s25  ;;  %s1021_s3 = sand.u32 (!%p205_p3), 1, %s894_s10  }
  0x1e   : > { %680 = dma.hbm_to_vmem [thread:$0]  (!%p1005_p0), %s195_s28, 128, %s197_s29, %s181_s30, %s912_s8, %s912_s8, %s913_s15  }
  0x1f   : > { %208 = sbr.rel (%p205_p3) target bundleno = 93 (0x5d), region = 28  ;;  %s657_s4 = sshll.u32 (!%p205_p3), %s1021_s3, 3 }
  0x20   : > { %s211_s5 = scalar_lea.sflag (!%p205_p3), [#allocation3], %s1021_s3  ;;  %s214_s7 = scalar_lea.vmem (!%p205_p3), [#allocation2], %s657_s4 }
  0x24   : > { %877 = dma.done.wait (%p978_p8), %s211_s5, 128  }
  0x25   : > { %879 = vsyncadd (%p978_p8), %s211_s5, 4294967168  ;;  %s221_s25 = scalar_lea.sflag [#allocation6], %s1021_s3  ;;  %s224_s26 = scalar_lea.vmem [#allocation5], %s657_s4 }
  0x26   : > { %881 = dma.done.wait (%p978_p8), %s221_s25, 128  }
  0x27   : > { %883 = vsyncadd (%p978_p8), %s221_s25, 4294967168  ;;  %v1034_v0 = vld [vmem:[%s214_s7] sm:$0x3]  ;;  %v1036_v1 = vld [vmem:[%s214_s7 + $0x2] sm:$0x3]  ;;  %vm433_vm1 = vcmask 1041408  }
  0x28   : > { %v285_v2 = vand.u32 2147483647, %v1034_v0  ;;  %v286_v3 = vand.u32 2147483647, %v1036_v1  ;;  %v1040_v4 = vld [vmem:[%s214_s7 + $0x4] sm:$0x3] }
  0x29   : > { %v287_v6 = vand.u32 2147483647, %v1040_v4  ;;  %v1043_v7 = vld [vmem:[%s214_s7 + $0x6] sm:$0x3]  ;;  %v1046_v10 = vld [vmem:[%s224_s26] sm:$0x3] }
  0x2a   : > { %v289_v5 = vsub.f32 0.0, %v285_v2  ;;  %v290_v8 = vsub.f32 0.0, %v286_v3  ;;  %v288_v9 = vand.u32 2147483647, %v1043_v7  ;;  %v1048_v13 = vld [vmem:[%s224_s26 + $0x2] sm:$0x3]  ;;  %v305_v21 = vmul.f32 %v1046_v10, %v1034_v0 }
  0x2b   : > { %v291_v12 = vsub.f32 0.0, %v287_v6  ;;  %v1050_v16 = vld [vmem:[%s224_s26 + $0x4] sm:$0x3]  ;;  %v301_v18 = vmax.f32 %v1034_v0, 0.0  ;;  %v1053_v19 = vld [vmem:[%s224_s26 + $0x6] sm:$0x3]  ;;  %v306_v23 = vmul.f32 %v1048_v13, %v1036_v1 }
  0x2c   : > { %v293_v11 = vmul.f32 1.442695, %v289_v5  ;;  %v295_v14 = vmul.f32 1.442695, %v290_v8  ;;  %v292_v15 = vsub.f32 0.0, %v288_v9  ;;  %v302_v22 = vmax.f32 %v1036_v1, 0.0 }
  0x2d   : > { %v297_v17 = vmul.f32 1.442695, %v291_v12  ;;  %v303_v24 = vmax.f32 %v1040_v4, 0.0  ;;  %v307_v25 = vmul.f32 %v1050_v16, %v1040_v4  ;;  %v304_v26 = vmax.f32 %v1043_v7, 0.0  ;;  %s659_s21 = sshll.u32 %s1021_s3, 7  ;;  %s667_s6 = sshll.u32 %s902_s12, 7 }
  0x2e   : > { %740 = vpow2.f32 %v293_v11  ;;  %v299_v20 = vmul.f32 1.442695, %v292_v15  ;;  %v308_v27 = vmul.f32 %v1053_v19, %v1043_v7  ;;  %v309_v29 = vsub.f32 %v301_v18, %v305_v21  ;;  %s1171_s27 = scalar_lea.vmem [#allocation7], %s659_s21  ;;  %s528_s15 = scalar_lea.hbm %s1312_s2, %s667_s6 }
  0x2f   : > { %742 = vpow2.f32 %v295_v14  ;;  %v1068_v30 = vsub.f32 %v302_v22, %v306_v23  ;;  %v1077_v35 = vsub.f32 %v303_v24, %v307_v25  ;;  %vm417_vm9 = vcmp.ge.f32.partialorder %v1034_v0, 0.0  ;;  %s529_s16 = sshll.u32 %s1171_s27, 4  ;;  %s531_s18 = sshll.u32 %s528_s15, 4  ;;  %s530_s16 = int_to_ptr.vmem [resolvable:$true] %s529_s16  ;;  %s532_s18 = int_to_ptr.hbm [resolvable:$true] %s531_s18 }
  0x30   : > { %744 = vpow2.f32 %v297_v17  ;;  %v1086_v40 = vsub.f32 %v304_v26, %v308_v27  ;;  %vm418_vm13 = vcmp.ge.f32.partialorder %v1036_v1, 0.0  ;;  %vm419_vm15 = vcmp.ge.f32.partialorder %v1040_v4, 0.0  ;;  %s515_s20 = scalar_lea.sflag [#allocation4], %s1021_s3  ;;  %s838_s28 = sshra.s32 %s532_s18, 4  ;;  %s839_s28 = int_to_ptr.hbm [resolvable:$true] %s838_s28 }
  0x31   : > { %746 = vpow2.f32 %v299_v20  ;;  %v499_v25 = vsel %vm433_vm1, %v1048_v13, 0.0  ;;  %s840_s19 = scalar_lea.hbm %s839_s28, 128  ;;  %s844_s4 = scalar_lea.hbm %s1312_s2, 256 }
  0x32   : > { %511 = vst [vmem:[%s1171_s27 + $0x68] sm:$0xff] %v499_v25  ;;  %p841_p4 = scmp.ne.s32.totalorder %s839_s28, %s840_s19  ;;  %p845_p7 = scmp.lt.s32.totalorder %s839_s28, %s1312_s2 }
  0x33   : > { %p846_p8 = scmp.lt.s32.totalorder %s844_s4, %s840_s19 }
  0x34   : > { %v1066_v28 = vpop.eup %740  ;;  %p842_p5 = pnand %p841_p4, %p982_p9 }
  0x35   : > { %v1070_v31 = vpop.eup %742  ;;  %v1073_v32 = vadd.f32 1.0, %v1066_v28  ;;  %v316_v33 = vmul.f32 -0.5, %v1066_v28  ;;  %v319_v34 = vand.u32 2147483647, %v1066_v28  ;;  %p847_p10 = por %p846_p8, %p845_p7 }
  0x36   : > { %v1079_v36 = vpop.eup %744  ;;  %v1082_v37 = vadd.f32 1.0, %v1070_v31  ;;  %v325_v38 = vmul.f32 -0.5, %v1070_v31  ;;  %v328_v39 = vand.u32 2147483647, %v1070_v31  ;;  %p843_p6 = pneg %p842_p5 }
  0x37   : > { %v1088_v41 = vpop.eup %746  ;;  %748 = vlog2.f32 %v1073_v32  ;;  %v317_v42 = vadd.f32 1.0, %v316_v33  ;;  %vm1091_vm0 = vcmp.lt.f32.partialorder %v319_v34, 0.0004427343  ;;  %v1096_v44 = vadd.f32 1.0, %v1079_v36 }
  0x38   : > { %750 = vrcp.f32 %v1073_v32  ;;  %v326_v45 = vadd.f32 1.0, %v325_v38  ;;  %vm1099_vm2 = vcmp.lt.f32.partialorder %v328_v39, 0.0004427343  ;;  %v334_v47 = vmul.f32 -0.5, %v1079_v36  ;;  %p848_p13 = pnand %p847_p10, %p843_p6 }
  0x39   : > { %v318_v48 = vmul.f32 %v1066_v28, %v317_v42  ;;  %752 = vlog2.f32 %v1082_v37  ;;  %v337_v49 = vand.u32 2147483647, %v1079_v36  ;;  %v1108_v50 = vadd.f32 1.0, %v1088_v41 }
  0x3a   : > { %v327_v51 = vmul.f32 %v1070_v31, %v326_v45  ;;  %754 = vrcp.f32 %v1082_v37  ;;  %v335_v52 = vadd.f32 1.0, %v334_v47  ;;  %v343_v53 = vmul.f32 -0.5, %v1088_v41 }
  0x3b   : > { %756 = vlog2.f32 %v1096_v44  ;;  %vm1114_vm3 = vcmp.lt.f32.partialorder %v337_v49, 0.0004427343  ;;  %v346_v55 = vand.u32 2147483647, %v1088_v41  ;;  %vm362_vm4 = vweird.f32 %v1073_v32 }
  0x3c   : > { %v336_v56 = vmul.f32 %v1079_v36, %v335_v52  ;;  %758 = vrcp.f32 %v1096_v44  ;;  %v344_v57 = vadd.f32 1.0, %v343_v53  ;;  %v366_v58 = vand.u32 2147483647, %v1073_v32 }
  0x3d   : > { %v749_v59 = vpop.eup %748  ;;  %760 = vlog2.f32 %v1108_v50  ;;  %vm1124_vm5 = vcmp.lt.f32.partialorder %v346_v55, 0.0004427343  ;;  %v368_v61 = vand.u32 2147483648, %v1073_v32  ;;  %vm377_vm6 = vweird.f32 %v1082_v37 }
  0x3e   : > { %v751_v62 = vpop.eup %750  ;;  %v315_v63 = vmul.f32 0.6931472, %v749_v59  ;;  %v345_v2 = vmul.f32 %v1088_v41, %v344_v57  ;;  %762 = vrcp.f32 %v1108_v50  ;;  %vm1132_vm7 = vcmp.eq.f32.partialorder %v366_v58, 8.507059e+37 }
  0x3f   : > { %v753_v5 = vpop.eup %752  ;;  %v358_v6 = vmul.f32 %v751_v62, %v1073_v32  ;;  %vm363_vm8 = vweird.f32 %v751_v62  ;;  %v369_v8 = vor.u32 1.1754944e-38, %v368_v61  ;;  %v381_v9 = vand.u32 2147483647, %v1082_v37 }
  0x40   : > { %v755_v11 = vpop.eup %754  ;;  %v321_v12 = vsel %vm1091_vm0, %v318_v48, %v315_v63  ;;  %v324_v14 = vmul.f32 0.6931472, %v753_v5  ;;  %v383_v15 = vand.u32 2147483648, %v1082_v37  ;;  %vm392_vm10 = vweird.f32 %v1096_v44  ;;  %vm1161_vm14 = vmor %vm362_vm4, %vm363_vm8 }
  0x41   : > { %v757_v17 = vpop.eup %756  ;;  %v349_v18 = vadd.f32 %v321_v12, %v309_v29  ;;  %v359_v20 = vsub.f32 1.0, %v358_v6  ;;  %v373_v21 = vmul.f32 %v755_v11, %v1082_v37  ;;  %vm378_vm11 = vweird.f32 %v755_v11 }
  0x42   : > { %v759_v22 = vpop.eup %758  ;;  %v330_v23 = vsel %vm1099_vm2, %v327_v51, %v324_v14  ;;  %v333_v24 = vmul.f32 0.6931472, %v757_v17  ;;  %vm1147_vm12 = vcmp.eq.f32.partialorder %v381_v9, 8.507059e+37  ;;  %v384_v26 = vor.u32 1.1754944e-38, %v383_v15  ;;  %vm1179_vm0 = vmor %vm377_vm6, %vm378_vm11 }
  0x43   : > { %v761_v27 = vpop.eup %760  ;;  %v434_v29 = vsel %vm433_vm1, %v349_v18, 0.0  ;;  %v350_v33 = vadd.f32 %v330_v23, %v1068_v30  ;;  %v360_v34 = vmul.f32 %v751_v62, %v359_v20  ;;  %v374_v38 = vsub.f32 1.0, %v373_v21 }
  0x44   : > { %v1154_v39 = vpop.eup %762  ;;  %v339_v42 = vsel %vm1114_vm3, %v336_v56, %v333_v24  ;;  %v342_v43 = vmul.f32 0.6931472, %v761_v27  ;;  %v388_v46 = vmul.f32 %v759_v22, %v1096_v44  ;;  %446 = vst [vmem:[%s1171_s27] sm:$0xff] %v434_v29  ;;  %vm393_vm2 = vweird.f32 %v759_v22 }
  0x45   : > { %v435_v47 = vsel %vm433_vm1, %v350_v33, 0.0  ;;  %v351_v30 = vadd.f32 %v339_v42, %v1077_v35  ;;  %v361_v48 = vadd.f32 %v751_v62, %v360_v34  ;;  %v375_v49 = vmul.f32 %v755_v11, %v374_v38  ;;  %vm1197_vm3 = vmor %vm392_vm10, %vm393_vm2 }
  0x46   : > { %v348_v32 = vsel %vm1124_vm5, %v345_v2, %v342_v43  ;;  %v389_v35 = vsub.f32 1.0, %v388_v46  ;;  %447 = vst [vmem:[%s1171_s27 + $0x8] sm:$0xff] %v435_v47  ;;  %v396_v57 = vand.u32 2147483647, %v1096_v44  ;;  %v398_v61 = vand.u32 2147483648, %v1096_v44 }
  0x47   : > { %v436_v52 = vsel %vm433_vm1, %v351_v30, 0.0  ;;  %v352_v53 = vadd.f32 %v348_v32, %v1086_v40  ;;  %v365_v54 = vsel %vm1161_vm14, %v751_v62, %v361_v48  ;;  %v376_v55 = vadd.f32 %v755_v11, %v375_v49 }
  0x48   : > { %v370_v56 = vsel %vm1132_vm7, %v369_v8, %v365_v54  ;;  %v390_v37 = vmul.f32 %v759_v22, %v389_v35  ;;  %448 = vst [vmem:[%s1171_s27 + $0x10] sm:$0xff] %v436_v52  ;;  %vm397_vm4 = vcmp.eq.f32.partialorder %v396_v57, 8.507059e+37  ;;  %v399_v3 = vor.u32 1.1754944e-38, %v398_v61 }
  0x49   : > { %v437_v58 = vsel %vm433_vm1, %v352_v53, 0.0  ;;  %v421_v59 = vmul.f32 %v1066_v28, %v370_v56  ;;  %v380_v60 = vsel %vm1179_vm0, %v755_v11, %v376_v55  ;;  %v403_v5 = vmul.f32 %v1154_v39, %v1108_v50 }
  0x4a   : > { %v385_v62 = vsel %vm1147_vm12, %v384_v26, %v380_v60  ;;  %v391_v63 = vadd.f32 %v759_v22, %v390_v37  ;;  %449 = vst [vmem:[%s1171_s27 + $0x18] sm:$0xff] %v437_v58  ;;  %vm407_vm5 = vweird.f32 %v1108_v50  ;;  %vm408_vm6 = vweird.f32 %v1154_v39 }
  0x4b   : > { %v425_v28 = vsel %vm417_vm9, %v370_v56, %v421_v59  ;;  %v422_v2 = vmul.f32 %v1070_v31, %v385_v62  ;;  %vm420_vm7 = vcmp.ge.f32.partialorder %v1043_v7, 0.0  ;;  %v404_v8 = vsub.f32 1.0, %v403_v5  ;;  %vm409_vm9 = vmor %vm407_vm5, %vm408_vm6 }
  0x4c   : > { %v454_v6 = vmul.f32 %v425_v28, %v1046_v10  ;;  %v395_v44 = vsel %vm1197_vm3, %v759_v22, %v391_v63  ;;  %v411_v9 = vand.u32 2147483647, %v1108_v50  ;;  %v413_v15 = vand.u32 2147483648, %v1108_v50 }
  0x4d   : > { %v426_v0 = vsel %vm418_vm13, %v385_v62, %v422_v2  ;;  %v400_v31 = vsel %vm397_vm4, %v399_v3, %v395_v44  ;;  %v405_v17 = vmul.f32 %v1154_v39, %v404_v8  ;;  %v478_v18 = vsel %vm433_vm1, %v425_v28, 0.0 }
  0x4e   : > { %v458_v11 = vsel %vm433_vm1, %v454_v6, 0.0  ;;  %v455_v12 = vmul.f32 %v426_v0, %v1048_v13  ;;  %v423_v14 = vmul.f32 %v1079_v36, %v400_v31  ;;  %vm1225_vm8 = vcmp.eq.f32.partialorder %v411_v9, 8.507059e+37  ;;  %490 = vst [vmem:[%s1171_s27 + $0x40] sm:$0xff] %v478_v18 }
  0x4f   : > { %v414_v36 = vor.u32 1.1754944e-38, %v413_v15  ;;  %470 = vst [vmem:[%s1171_s27 + $0x20] sm:$0xff] %v458_v11  ;;  %v406_v23 = vadd.f32 %v1154_v39, %v405_v17  ;;  %v479_v24 = vsel %vm433_vm1, %v426_v0, 0.0  ;;  %v498_v50 = vsel %vm433_vm1, %v1046_v10, 0.0 }
  0x50   : > { %v459_v20 = vsel %vm433_vm1, %v455_v12, 0.0  ;;  %v427_v21 = vsel %vm419_vm15, %v400_v31, %v423_v14  ;;  %491 = vst [vmem:[%s1171_s27 + $0x48] sm:$0xff] %v479_v24  ;;  %v500_v33 = vsel %vm433_vm1, %v1050_v16, 0.0  ;;  %v501_v13 = vsel %vm433_vm1, %v1053_v19, 0.0 }
  0x51   : > { %v456_v22 = vmul.f32 %v427_v21, %v1050_v16  ;;  %v480_v4 = vsel %vm433_vm1, %v427_v21, 0.0  ;;  %471 = vst [vmem:[%s1171_s27 + $0x28] sm:$0xff] %v459_v20  ;;  %v410_v27 = vsel %vm409_vm9, %v1154_v39, %v406_v23 }
  0x52   : > { %v415_v29 = vsel %vm1225_vm8, %v414_v36, %v410_v27  ;;  %492 = vst [vmem:[%s1171_s27 + $0x50] sm:$0xff] %v480_v4 }
  0x53   : > { %v460_v26 = vsel %vm433_vm1, %v456_v22, 0.0  ;;  %v424_v10 = vmul.f32 %v1088_v41, %v415_v29  ;;  %510 = vst [vmem:[%s1171_s27 + $0x60] sm:$0xff] %v498_v50 }
  0x54   : > { %472 = vst [vmem:[%s1171_s27 + $0x30] sm:$0xff] %v460_v26 }
  0x55   : > { %v428_v34 = vsel %vm420_vm7, %v415_v29, %v424_v10  ;;  %512 = vst [vmem:[%s1171_s27 + $0x70] sm:$0xff] %v500_v33 }
  0x56   : > { %v457_v16 = vmul.f32 %v428_v34, %v1053_v19  ;;  %v481_v38 = vsel %vm433_vm1, %v428_v34, 0.0  ;;  %513 = vst [vmem:[%s1171_s27 + $0x78] sm:$0xff] %v501_v13 }
  0x57   : > { %493 = vst [vmem:[%s1171_s27 + $0x58] sm:$0xff] %v481_v38 }
  0x58   : > { %v461_v41 = vsel %vm433_vm1, %v457_v16, 0.0 }
  0x59   : > { %473 = vst [vmem:[%s1171_s27 + $0x38] sm:$0xff] %v461_v41 }
  0x5a   : > { %851 = shalt.err (!%p848_p13)
}
  0x5b   : > { %s914_s3 = smov 128   ;;  %s915_s25 = smov 8  }
  0x5c   : > { %672 = dma.vmem_to_hbm [thread:$0]  (%p982_p9), %s530_s16, 2048, %s532_s18, %s515_s20, %s914_s3, %s914_s3, %s915_s25  }
  0x5d PF: > { %s546_s26 = sand.u32 1, %s890_s9   ;;  %p682_p0 = pnand %p649_p12, %p989_p11 }
  0x5e   : > { %s547_s21 = scalar_lea.sflag [#allocation4], %s546_s26 }
  0x5f   : > { %p683_p1 = pneg %p682_p0 }
  0x61   : > { %885 = dma.done.wait (%p683_p1), %s547_s21, 2048  }
  0x62   : > { %887 = vsyncadd (%p683_p1), %s547_s21, 4294965248  ;;  %s21_s14 = sadd.s32 1, %s910_s14   ;;  %s1338_s9 = smov %s894_s10 }
  0x63   : > { %p18_p2 = scmp.ge.s32.totalorder %s21_s14, 4   ;;  %s1339_s10 = smov %s898_s11 }
  0x64   : > { %s1340_s11 = smov %s987_s23  ;;  %s1341_s12 = smov %s906_s13 }
  0x65   : > { %s1342_s13 = smov %s1344_s17  ;;  %20 = sbr.rel (!%p18_p2) target bundleno = 8 (0x8), region = 90 }
  0x6a   :  { %553 = vsyncpa [#allocation3], 1 }
  0x6b   :  { %555 = vsyncpa [#allocation3 + $0x1], 1 }
  0x6c   :  { %556 = vsyncpa [#allocation6], 1 }
  0x6d   :  { %558 = vsyncpa [#allocation6 + $0x1], 1 }
  0x6e   :  { %559 = vsyncpa [#allocation4], 1 }
  0x6f   :  { %561 = vsyncpa [#allocation4 + $0x1], 1 }

</bundles_post_ra>
